<compile_context>
chip_gen: v7x
topology: tpu7x:2x2x1
jax: 0.10.0
libtpu: 0.0.40
codegen_flags: <defaults>
</compile_context>

<pallas_src>
import functools

import jax
import jax.numpy as jnp
from jax.experimental import pallas as pl
from jax.experimental.pallas import tpu as pltpu


def forward_model_kernel(fT_ref, aT_ref, w1fT_ref, w1aT_ref, b1_ref,
                         w2T_ref, b2_ref, oT_ref):
    """One batch tile; batch lives on the lane (last) axis of every block.

    fT_ref:   (F, tm)  feature^T tile   (pipelined)
    aT_ref:   (A, tm)  action^T tile    (pipelined)
    w1fT_ref: (H, F)   W1[:F]^T         (resident)
    w1aT_ref: (H, A)   W1[F:]^T         (resident)
    b1_ref:   (H, 1)
    w2T_ref:  (F, H)   W2^T             (resident)
    b2_ref:   (F, 1)
    oT_ref:   (F, tm)  output^T tile
    """
    # Layer 1: h^T = W1f^T @ f^T + W1a^T @ a^T + b1. The concat is folded
    # into two contractions; both run on the MXU (the kernel is HBM-bound,
    # so MXU slack makes the tiny K=A matmul free). f32 operands, f32 acc.
    h = jnp.dot(w1fT_ref[...], fT_ref[...], preferred_element_type=jnp.float32)
    h = h + jnp.dot(w1aT_ref[...], aT_ref[...],
                    preferred_element_type=jnp.float32)
    h = jnp.maximum(h + b1_ref[...], 0.0)            # bias + ReLU on the VPU

    # Layer 2: o^T = W2^T @ h^T + b2 (MXU, f32 accumulation).
    o = jnp.dot(w2T_ref[...], h, preferred_element_type=jnp.float32) + b2_ref[...]
    oT_ref[...] = o.astype(oT_ref.dtype)


def _pick_batch_tile(batch, block_m):
    """Lane-axis batch tile: full batch when small (full-dim exemption from
    the (8,128) rule), otherwise a multiple of 128 that gives the grid at
    least 2 steps (v7x megacore) and stays <= block_m (VMEM headroom)."""
    if batch <= 256:
        return batch
    half = ((batch + 1) // 2 + 127) // 128 * 128      # round_up(ceil(B/2), 128)
    return max(128, min(block_m, half))


@functools.partial(jax.jit, static_argnames=("block_m", "out_dtype"))
def forward_model_pallas(feature, action, params, *, block_m=512,
                         out_dtype=None):
    """feature: (B, F), action: (B, A) -> (B, F) via the Pallas kernel."""
    w1, b1, w2, b2 = params["w1"], params["b1"], params["w2"], params["b2"]
    B, F = feature.shape
    _, A = action.shape
    H = w1.shape[1]
    assert w1.shape == (F + A, H) and w2.shape == (H, F)
    out_dtype = feature.dtype if out_dtype is None else out_dtype

    # Batch-on-lanes layout: transpose activations in the wrapper; weights are
    # handed to the kernel already transposed so it never moves them.
    # Everything stays f32 (memory-bound regime -> bf16 operands buy nothing).
    fT = feature.T.astype(jnp.float32)           # (F, B)
    aT = action.T.astype(jnp.float32)            # (A, B)
    w1fT = w1[:F].T.astype(jnp.float32)          # (H, F) concat fold: feature rows
    w1aT = w1[F:].T.astype(jnp.float32)          # (H, A) concat fold: action rows
    w2T = w2.T.astype(jnp.float32)               # (F, H)
    b1_2d = b1.reshape(H, 1).astype(jnp.float32)
    b2_2d = b2.reshape(F, 1).astype(jnp.float32)

    tm = _pick_batch_tile(B, block_m)
    grid = (pl.cdiv(B, tm),)

    cost = pl.CostEstimate(
        flops=2 * B * (F + A) * H + 2 * B * H * F,
        transcendentals=0,
        bytes_accessed=(fT.size + aT.size + w1fT.size + w1aT.size + w2T.size
                        + b1_2d.size + b2_2d.size) * 4
                       + B * F * jnp.dtype(out_dtype).itemsize,
    )

    # TODO(synk): at production weight sizes, mark the resident weight/bias
    # specs pl.Buffered(1) to reclaim the unused second pipeline buffer.
    # TODO(synk): at tiny batch the real win is fusing this with the adjacent
    # ICM inverse-model / reward computation into one pallas_call.
    oT = pl.pallas_call(
        forward_model_kernel,
        out_shape=jax.ShapeDtypeStruct((F, B), out_dtype),
        grid=grid,
        in_specs=[
            pl.BlockSpec((F, tm), lambda i: (0, i)),   # feature^T tile (pipelined)
            pl.BlockSpec((A, tm), lambda i: (0, i)),   # action^T tile  (pipelined)
            pl.BlockSpec((H, F), lambda i: (0, 0)),    # W1f^T (resident)
            pl.BlockSpec((H, A), lambda i: (0, 0)),    # W1a^T (resident)
            pl.BlockSpec((H, 1), lambda i: (0, 0)),    # b1    (resident)
            pl.BlockSpec((F, H), lambda i: (0, 0)),    # W2^T  (resident)
            pl.BlockSpec((F, 1), lambda i: (0, 0)),    # b2    (resident)
        ],
        out_specs=pl.BlockSpec((F, tm), lambda i: (0, i)),
        compiler_params=pltpu.CompilerParams(
            # Batch axis is independent across steps -> megacore split on v7x.
            # (If plain "parallel" does not shard across the two TCs on v7x,
            #  switch this axis to pltpu.CORE_PARALLEL.)
            dimension_semantics=("parallel",),
        ),
        cost_estimate=cost,
    )(fT, aT, w1fT, w1aT, b1_2d, w2T, b2_2d)

    return oT.T                                   # (B, F)


def forward_model(feature, action, params, *, block_m=512,
                  min_pallas_batch=256):
    """ForwardModel.forward. Below `min_pallas_batch` the whole model is a few
    KFLOP and the kernel is launch/DMA-overhead bound on every TPU
    generation, so let XLA fuse the two matmuls instead."""
    if feature.shape[0] < min_pallas_batch:
        return forward_model_ref(feature, action, params)
    return forward_model_pallas(feature, action, params, block_m=block_m)


def init_params(key, feature_dim, action_dim, hidden_dim):
    """Deterministic synthetic parameters (not a checkpoint load)."""
    k1, k2, k3, k4 = jax.random.split(key, 4)
    in_dim = feature_dim + action_dim
    w1 = jax.random.normal(k1, (in_dim, hidden_dim), jnp.float32) * 0.05
    b1 = jax.random.normal(k2, (hidden_dim,), jnp.float32) * 0.01
    w2 = jax.random.normal(k3, (hidden_dim, feature_dim), jnp.float32) * 0.05
    b2 = jax.random.normal(k4, (feature_dim,), jnp.float32) * 0.01
    return {"w1": w1, "b1": b1, "w2": w2, "b2": b2}


def forward_model_ref(feature, action, params):
    x = jnp.concatenate([feature, action], axis=1)
    h = jnp.maximum(x @ params["w1"] + params["b1"], 0.0)
    return h @ params["w2"] + params["b2"]


if __name__ == "__main__":
    FEATURE_DIM, ACTION_DIM, HIDDEN_DIM = 32, 4, 64

    key = jax.random.PRNGKey(0)
    kf, ka, kp = jax.random.split(key, 3)
    params = init_params(kp, FEATURE_DIM, ACTION_DIM, HIDDEN_DIM)

    # Small-batch check: exercises the Pallas kernel directly (single grid
    # step, lane axis = full batch via the full-dim exemption).
    B_SMALL = 8
    feature = jax.random.normal(kf, (B_SMALL, FEATURE_DIM), jnp.float32)
    action = jax.random.normal(ka, (B_SMALL, ACTION_DIM), jnp.float32)
    out = jax.block_until_ready(forward_model_pallas(feature, action, params))
    ref = forward_model_ref(feature, action, params)
    assert out.shape == (B_SMALL, FEATURE_DIM)
    assert jnp.allclose(out, ref, atol=5e-3, rtol=5e-3), "mismatch (B=8)"

    # Larger-batch check through the dispatcher: lane-aligned tile tm=256 and
    # a 2-step grid, so both v7x TensorCores get work and the pipeline runs.
    B_BIG = 512
    kf2, ka2 = jax.random.split(jax.random.PRNGKey(1), 2)
    feature_b = jax.random.normal(kf2, (B_BIG, FEATURE_DIM), jnp.float32)
    action_b = jax.random.normal(ka2, (B_BIG, ACTION_DIM), jnp.float32)
    out_b = jax.block_until_ready(forward_model(feature_b, action_b, params))
    ref_b = forward_model_ref(feature_b, action_b, params)
    assert out_b.shape == (B_BIG, FEATURE_DIM)
    assert jnp.allclose(out_b, ref_b, atol=5e-3, rtol=5e-3), "mismatch (B=512)"

    print("KERNEL_OK")
</pallas_src>

<mosaic_0001>
module attributes {stable_mosaic.version = 11 : i64} {
  func.func @forward_model_kernel(%arg0: i32, %arg1: memref<32x8xf32, #tpu.memory_space<vmem>>, %arg2: memref<4x8xf32, #tpu.memory_space<vmem>>, %arg3: memref<64x32xf32, #tpu.memory_space<vmem>>, %arg4: memref<64x4xf32, #tpu.memory_space<vmem>>, %arg5: memref<64x1xf32, #tpu.memory_space<vmem>>, %arg6: memref<32x64xf32, #tpu.memory_space<vmem>>, %arg7: memref<32x1xf32, #tpu.memory_space<vmem>>, %arg8: memref<32x8xf32, #tpu.memory_space<vmem>>) attributes {dimension_semantics = [#tpu.dimension_semantics<parallel>], iteration_bounds = array<i64: 1>, scalar_prefetch = 0 : i64, scratch_operands = 0 : i64, tpu.core_type = #tpu.core_type<tc>, window_params = [{transform_indices = @transform_0, window_bounds = array<i64: 32, 8>}, {transform_indices = @transform_1, window_bounds = array<i64: 4, 8>}, {pipeline_mode = #tpu.pipeline_mode<synchronous>, transform_indices = @transform_2, window_bounds = array<i64: 64, 32>}, {pipeline_mode = #tpu.pipeline_mode<synchronous>, transform_indices = @transform_3, window_bounds = array<i64: 64, 4>}, {pipeline_mode = #tpu.pipeline_mode<synchronous>, transform_indices = @transform_4, window_bounds = array<i64: 64, 1>}, {pipeline_mode = #tpu.pipeline_mode<synchronous>, transform_indices = @transform_5, window_bounds = array<i64: 32, 64>}, {pipeline_mode = #tpu.pipeline_mode<synchronous>, transform_indices = @transform_6, window_bounds = array<i64: 32, 1>}, {transform_indices = @transform_7, window_bounds = array<i64: 32, 8>}]} {
    %c0 = arith.constant 0 : index
    %c0_0 = arith.constant 0 : index
    %0 = vector.load %arg3[%c0, %c0_0] : memref<64x32xf32, #tpu.memory_space<vmem>>, vector<64x32xf32>
    %c0_1 = arith.constant 0 : index
    %c0_2 = arith.constant 0 : index
    %1 = vector.load %arg1[%c0_1, %c0_2] : memref<32x8xf32, #tpu.memory_space<vmem>>, vector<32x8xf32>
    %cst = arith.constant dense<0.000000e+00> : vector<64x8xf32>
    %2 = tpu.matmul %0, %1, %cst {dimension_numbers = #tpu.dot_dimension_numbers<[1], [0], [0], [1], [0, 0, 1, 1], [], []>} : vector<64x32xf32>, vector<32x8xf32>, vector<64x8xf32> -> vector<64x8xf32>
    %c0_3 = arith.constant 0 : index
    %c0_4 = arith.constant 0 : index
    %3 = vector.load %arg4[%c0_3, %c0_4] : memref<64x4xf32, #tpu.memory_space<vmem>>, vector<64x4xf32>
    %c0_5 = arith.constant 0 : index
    %c0_6 = arith.constant 0 : index
    %4 = vector.load %arg2[%c0_5, %c0_6] : memref<4x8xf32, #tpu.memory_space<vmem>>, vector<4x8xf32>
    %cst_7 = arith.constant dense<0.000000e+00> : vector<64x8xf32>
    %5 = tpu.matmul %3, %4, %cst_7 {dimension_numbers = #tpu.dot_dimension_numbers<[1], [0], [0], [1], [0, 0, 1, 1], [], []>} : vector<64x4xf32>, vector<4x8xf32>, vector<64x8xf32> -> vector<64x8xf32>
    %6 = arith.addf %2, %5 : vector<64x8xf32>
    %c0_8 = arith.constant 0 : index
    %c0_9 = arith.constant 0 : index
    %7 = vector.load %arg5[%c0_8, %c0_9] : memref<64x1xf32, #tpu.memory_space<vmem>>, vector<64x1xf32>
    %8 = vector.broadcast %7 : vector<64x1xf32> to vector<64x8xf32>
    %9 = arith.addf %6, %8 : vector<64x8xf32>
    %cst_10 = arith.constant 0.000000e+00 : f32
    %10 = vector.broadcast %cst_10 : f32 to vector<64x8xf32>
    %11 = arith.maximumf %9, %10 : vector<64x8xf32>
    %c0_11 = arith.constant 0 : index
    %c0_12 = arith.constant 0 : index
    %12 = vector.load %arg6[%c0_11, %c0_12] : memref<32x64xf32, #tpu.memory_space<vmem>>, vector<32x64xf32>
    %cst_13 = arith.constant dense<0.000000e+00> : vector<32x8xf32>
    %13 = tpu.matmul %12, %11, %cst_13 {dimension_numbers = #tpu.dot_dimension_numbers<[1], [0], [0], [1], [0, 0, 1, 1], [], []>} : vector<32x64xf32>, vector<64x8xf32>, vector<32x8xf32> -> vector<32x8xf32>
    %c0_14 = arith.constant 0 : index
    %c0_15 = arith.constant 0 : index
    %14 = vector.load %arg7[%c0_14, %c0_15] : memref<32x1xf32, #tpu.memory_space<vmem>>, vector<32x1xf32>
    %15 = vector.broadcast %14 : vector<32x1xf32> to vector<32x8xf32>
    %16 = arith.addf %13, %15 : vector<32x8xf32>
    %c0_16 = arith.constant 0 : index
    %c0_17 = arith.constant 0 : index
    %17 = vector.load %arg8[%c0_16, %c0_17] : memref<32x8xf32, #tpu.memory_space<vmem>>, vector<32x8xf32>
    tpu.vector_store %arg8[%c0_16, %c0_17], %16 {strides = array<i32>} : memref<32x8xf32, #tpu.memory_space<vmem>>, vector<32x8xf32>,
    return
  }
  func.func @transform_0(%arg0: i32) -> (i32, i32) {
    %c0_i32 = arith.constant 0 : i32
    %c0_i32_0 = arith.constant 0 : i32
    return %c0_i32, %arg0 : i32, i32
  }
  func.func @transform_1(%arg0: i32) -> (i32, i32) {
    %c0_i32 = arith.constant 0 : i32
    %c0_i32_0 = arith.constant 0 : i32
    return %c0_i32, %arg0 : i32, i32
  }
  func.func @transform_2(%arg0: i32) -> (i32, i32) {
    %c0_i32 = arith.constant 0 : i32
    %c0_i32_0 = arith.constant 0 : i32
    %c0_i32_1 = arith.constant 0 : i32
    return %c0_i32, %c0_i32_0 : i32, i32
  }
  func.func @transform_3(%arg0: i32) -> (i32, i32) {
    %c0_i32 = arith.constant 0 : i32
    %c0_i32_0 = arith.constant 0 : i32
    %c0_i32_1 = arith.constant 0 : i32
    return %c0_i32, %c0_i32_0 : i32, i32
  }
  func.func @transform_4(%arg0: i32) -> (i32, i32) {
    %c0_i32 = arith.constant 0 : i32
    %c0_i32_0 = arith.constant 0 : i32
    %c0_i32_1 = arith.constant 0 : i32
    return %c0_i32, %c0_i32_0 : i32, i32
  }
  func.func @transform_5(%arg0: i32) -> (i32, i32) {
    %c0_i32 = arith.constant 0 : i32
    %c0_i32_0 = arith.constant 0 : i32
    %c0_i32_1 = arith.constant 0 : i32
    return %c0_i32, %c0_i32_0 : i32, i32
  }
  func.func @transform_6(%arg0: i32) -> (i32, i32) {
    %c0_i32 = arith.constant 0 : i32
    %c0_i32_0 = arith.constant 0 : i32
    %c0_i32_1 = arith.constant 0 : i32
    return %c0_i32, %c0_i32_0 : i32, i32
  }
  func.func @transform_7(%arg0: i32) -> (i32, i32) {
    %c0_i32 = arith.constant 0 : i32
    %c0_i32_0 = arith.constant 0 : i32
    return %c0_i32, %arg0 : i32, i32
  }
}

</mosaic_0001>

<bundles_post_ra>
// kernel: forward_model_pallas.1
= control target key start
LH: loop header
LB: loop body
LE: loop exit
PB: predicated region body
PF: predicated region fallthrough
CT: control target
= control target key end

     0   :  { %vm72_vm0 = vcmask 1043456   ;;  %vm47_vm1 = vcmask 31744   ;;  %v655_v3 = vmov 0   ;;  %vm181_vm2 = vcmask 261120   ;;  %s841_s0 = inlined_call_operand.vmem [shape: f32[32,8], index: 0, kind: input, shape index: {}]   ;;  %s842_s1 = inlined_call_operand.vmem [shape: f32[4,8], index: 1, kind: input, shape index: {}]   ;;  %s843_s3 = inlined_call_operand.vmem [shape: f32[64,4], index: 3, kind: input, shape index: {}]   ;;  %s844_s2 = inlined_call_operand.vmem [shape: f32[64,32], index: 2, kind: input, shape index: {}]   ;;  %s845_s4 = inlined_call_operand.vmem [shape: f32[64,1], index: 4, kind: input, shape index: {}]   ;;  %s846_s6 = inlined_call_operand.vmem [shape: f32[32,1], index: 6, kind: input, shape index: {}]   ;;  %s847_s5 = inlined_call_operand.vmem [shape: f32[32,64], index: 5, kind: input, shape index: {}]   ;;  %s848_s7 = inlined_call_operand.vmem [shape: f32[32,8], index: 7, kind: output, shape index: {}]  }
   0x1   :  { %v34_v0 = vld [vmem:[%s841_s0] sm:$0xff]  ;;  %v35_v1 = vld [vmem:[%s841_s0 + $0x8] sm:$0xff]  ;;  %v36_v2 = vld [vmem:[%s841_s0 + $0x10] sm:$0xff]  ;;  %653 = vset.pattern.permute.xlu0 %v655_v3  ;;  %654 = vset.pattern.permute.xlu1 %v655_v3  ;;  %vm403_vm3 = vcmask 523264   ;;  %vm501_vm4 = vcmask 64512  }
   0x2   :  { %v620_v4 = vpack.c.bf16 %v35_v1, %v34_v0  ;;  %v37_v5 = vld [vmem:[%s841_s0 + $0x18] sm:$0xff]  ;;  %v46_v6 = vld [vmem:[%s842_s1] sm:$0xf]  ;;  %v39_v9 = vld [vmem:[%s843_s3 + $0x8] sm:$0xff] }
   0x3   :  { %v38_v7 = vld [vmem:[%s843_s3] sm:$0xff]  ;;  %v624_v8 = vpack.c.bf16 %v37_v5, %v36_v2  ;;  %564 = vmatprep.subr.msk.mxu1 %vm72_vm0, %v46_v6  ;;  %v40_v11 = vld [vmem:[%s843_s3 + $0x10] sm:$0xff]  ;;  %v41_v12 = vld [vmem:[%s843_s3 + $0x18] sm:$0xff] }
   0x4   :  { %566 = vmatprep.mubr.msk.f32.mxu1 %vm47_vm1, %v38_v7  ;;  %v26_v10 = vld [vmem:[%s844_s2] sm:$0xff]  ;;  %621 = vmatprep.subr.bf16.mxu0 %v620_v4  ;;  %v313_v15 = vld [vmem:[%s845_s4 + $0x10] sm:$0xff]  ;;  %v27_v16 = vld [vmem:[%s844_s2 + $0x8] sm:$0xff] }
   0x5   :  { %565 = vmatpush3.msk.msra.mxu1 %vm72_vm0, %v46_v6  ;;  %623 = vmatpush3.bf16.msra.mxu0 %v620_v4  ;;  %v42_v13 = vld [vmem:[%s843_s3 + $0x20] sm:$0xff]  ;;  %v28_v17 = vld [vmem:[%s844_s2 + $0x10] sm:$0xff]  ;;  %v43_v18 = vld [vmem:[%s843_s3 + $0x28] sm:$0xff] }
   0x6   :  { %567 = vmatmul.mubr.msk.f32.vlgmr.msra.gmra.mrb[0].mxu1 %vm47_vm1, %v39_v9  ;;  %625 = vmatprep.subr.bf16.mxu0 %v624_v8  ;;  %v311_v14 = vld [vmem:[%s845_s4] sm:$0xff]  ;;  %v44_v19 = vld [vmem:[%s843_s3 + $0x30] sm:$0xff]  ;;  %v312_v20 = vld [vmem:[%s845_s4 + $0x8] sm:$0xff] }
   0x7   :  { %586 = vmatprep.mubr.msk.f32.mxu0 %vm181_vm2, %v26_v10  ;;  %569 = vmatprep.mubr.msk.f32.mxu1 %vm47_vm1, %v40_v11  ;;  %v314_v21 = vld [vmem:[%s845_s4 + $0x18] sm:$0xff]  ;;  %v30_v23 = vld [vmem:[%s844_s2 + $0x20] sm:$0xff]  ;;  %v316_v26 = vld [vmem:[%s845_s4 + $0x28] sm:$0xff] }
   0x8   :  { %321 = vperm.xlu0 %653, %v311_v14   ;;  %331 = vperm.xlu1 %654, %v313_v15   ;;  %v29_v22 = vld [vmem:[%s844_s2 + $0x18] sm:$0xff]  ;;  %v315_v25 = vld [vmem:[%s845_s4 + $0x20] sm:$0xff]  ;;  %v31_v27 = vld [vmem:[%s844_s2 + $0x28] sm:$0xff] }
   0x9   :  { %627 = vmatpush3.bf16.msra.mxu0 %v624_v8  ;;  %v45_v24 = vld [vmem:[%s843_s3 + $0x38] sm:$0xff]  ;;  %v32_v28 = vld [vmem:[%s844_s2 + $0x30] sm:$0xff]  ;;  %v379_v32 = vld [vmem:[%s846_s6] sm:$0xff] }
   0xa   :  { %570 = vmatmul.mubr.msk.f32.gmra.mrb[2].mxu1 %vm47_vm1, %v41_v12  ;;  %v317_v29 = vld [vmem:[%s845_s4 + $0x30] sm:$0xff]  ;;  %v318_v30 = vld [vmem:[%s845_s4 + $0x38] sm:$0xff]  ;;  %v380_v33 = vld [vmem:[%s846_s6 + $0x8] sm:$0xff] }
   0xb   :  { %572 = vmatprep.mubr.msk.f32.mxu1 %vm47_vm1, %v42_v13  ;;  %v33_v31 = vld [vmem:[%s844_s2 + $0x38] sm:$0xff]  ;;  %v381_v34 = vld [vmem:[%s846_s6 + $0x10] sm:$0xff]  ;;  %v375_v36 = vld [vmem:[%s847_s5] sm:$0xff] }
   0xc   :  { %587 = vmatmul.mubr.msk.f32.vlgmr.msra.gmra.mrb[0].mxu0 %vm181_vm2, %v27_v16  ;;  %326 = vperm.xlu0 %653, %v312_v20   ;;  %v382_v35 = vld [vmem:[%s846_s6 + $0x18] sm:$0xff] }
   0xd   :  { %589 = vmatprep.mubr.msk.f32.mxu0 %vm181_vm2, %v28_v17  ;;  %336 = vperm.xlu1 %654, %v314_v21  }
   0xe   :  { %573 = vmatmul.mubr.msk.f32.gmra.mrb[4].mxu1 %vm47_vm1, %v43_v18 }
   0xf   :  { %575 = vmatprep.mubr.msk.f32.mxu1 %vm47_vm1, %v44_v19 }
  0x10   :  { %590 = vmatmul.mubr.msk.f32.gmra.mrb[2].mxu0 %vm181_vm2, %v29_v22  ;;  %341 = vperm.xlu0 %653, %v315_v25   ;;  %v376_v25 = vld [vmem:[%s847_s5 + $0x8] sm:$0xff] }
  0x11   :  { %592 = vmatprep.mubr.msk.f32.mxu0 %vm181_vm2, %v30_v23  ;;  %346 = vperm.xlu1 %654, %v316_v26   ;;  %v377_v26 = vld [vmem:[%s847_s5 + $0x10] sm:$0xff] }
  0x12   :  { %576 = vmatmul.mubr.msk.f32.gmra.mrb[6].mxu1 %vm47_vm1, %v45_v24 }
  0x13   :  { %614 = vmatprep.mubr.msk.f32.mxu1 %vm403_vm3, %v375_v36 }
  0x14   :  { %593 = vmatmul.mubr.msk.f32.gmra.mrb[4].mxu0 %vm181_vm2, %v31_v27  ;;  %351 = vperm.xlu0 %653, %v317_v29   ;;  %v378_v27 = vld [vmem:[%s847_s5 + $0x18] sm:$0xff] }
  0x15   :  { %595 = vmatprep.mubr.msk.f32.mxu0 %vm181_vm2, %v32_v28  ;;  %356 = vperm.xlu1 %654, %v318_v30  }
  0x18   :  { %596 = vmatmul.mubr.msk.f32.gmra.mrb[6].mxu0 %vm181_vm2, %v33_v31  ;;  %385 = vperm.xlu0 %653, %v379_v32  }
  0x19   :  { %390 = vperm.xlu1 %654, %v380_v33  }
  0x1c   :  { %395 = vperm.xlu0 %653, %v381_v34  }
  0x1d   :  { %400 = vperm.xlu1 %654, %v382_v35  }
  0x87   :  { %v322_v38 = vpop.permute.xlu0 %321  ;;  %v332_v40 = vpop.permute.xlu1 %331 }
  0x8b   :  { %v327_v43 = vpop.permute.xlu0 %326 }
  0x8c   :  { %v337_v48 = vpop.permute.xlu1 %336 }
  0x8f   :  { %v342_v2 = vpop.permute.xlu0 %341 }
  0x90   :  { %v347_v62 = vpop.permute.xlu1 %346 }
  0x93   :  { %v352_v18 = vpop.permute.xlu0 %351 }
  0x94   :  { %v357_v15 = vpop.permute.xlu1 %356 }
  0x97   :  { %v386_v29 = vpop.permute.xlu0 %385 }
  0x98   :  { %v391_v28 = vpop.permute.xlu1 %390 }
  0x9b   :  { %v396_v36 = vpop.permute.xlu0 %395 }
  0x9c   :  { %v401_v34 = vpop.permute.xlu1 %400 }
  0xd9   :  { %v568_v37 = vpop.f32.mrb[0].mxu1 }
  0xda   :  { %v142_v39 = vpop.f32.mrb[1].mxu1 }
  0xdd   :  { %v571_v41 = vpop.f32.mrb[2].mxu1 }
  0xde   :  { %v152_v42 = vpop.f32.mrb[3].mxu1 }
  0xdf   :  { %v588_v44 = vpop.f32.mrb[0].mxu0 }
  0xe0   :  { %v278_v45 = vadd.f32 %v588_v44, %v568_v37  ;;  %v272_v46 = vpop.f32.mrb[1].mxu0 }
  0xe1   :  { %v574_v47 = vpop.f32.mrb[4].mxu1  ;;  %v273_v49 = vadd.f32 %v272_v46, %v142_v39 }
  0xe2   :  { %v162_v50 = vpop.f32.mrb[5].mxu1  ;;  %v360_v51 = vadd.f32 %v327_v43, %v278_v45 }
  0xe3   :  { %v359_v52 = vadd.f32 %v322_v38, %v273_v49  ;;  %v591_v53 = vpop.f32.mrb[2].mxu0 }
  0xe4   :  { %v368_v54 = vmax.f32 %v360_v51, 0.0  ;;  %v288_v55 = vadd.f32 %v591_v53, %v571_v41  ;;  %v282_v56 = vpop.f32.mrb[3].mxu0 }
  0xe5   :  { %v577_v57 = vpop.f32.mrb[6].mxu1  ;;  %v367_v58 = vmax.f32 %v359_v52, 0.0  ;;  %v283_v59 = vadd.f32 %v282_v56, %v152_v42 }
  0xe6   :  { %v172_v60 = vpop.f32.mrb[7].mxu1  ;;  %v362_v61 = vadd.f32 %v337_v48, %v288_v55 }
  0xe7   :  { %v361_v63 = vadd.f32 %v332_v40, %v283_v59  ;;  %v594_v0 = vpop.f32.mrb[4].mxu0  ;;  %v628_v1 = vpack.c.bf16 %v368_v54, %v367_v58 }
  0xe8   :  { %v370_v3 = vmax.f32 %v362_v61, 0.0  ;;  %v298_v4 = vadd.f32 %v594_v0, %v574_v47  ;;  %v292_v5 = vpop.f32.mrb[5].mxu0 }
  0xe9   :  { %v369_v6 = vmax.f32 %v361_v63, 0.0  ;;  %v293_v7 = vadd.f32 %v292_v5, %v162_v50  ;;  %629 = vmatprep.subr.bf16.mxu1 %v628_v1 }
  0xea   :  { %v364_v8 = vadd.f32 %v347_v62, %v298_v4  ;;  %631 = vmatpush3.bf16.msra.mxu1 %v628_v1 }
  0xeb   :  { %v363_v9 = vadd.f32 %v342_v2, %v293_v7  ;;  %v597_v10 = vpop.f32.mrb[6].mxu0  ;;  %v632_v11 = vpack.c.bf16 %v370_v3, %v369_v6 }
  0xec   :  { %v372_v12 = vmax.f32 %v364_v8, 0.0  ;;  %v308_v13 = vadd.f32 %v597_v10, %v577_v57  ;;  %v302_v14 = vpop.f32.mrb[7].mxu0 }
  0xed   :  { %v371_v16 = vmax.f32 %v363_v9, 0.0  ;;  %v303_v17 = vadd.f32 %v302_v14, %v172_v60  ;;  %633 = vmatprep.subr.bf16.mxu1 %v632_v11 }
  0xee   :  { %v366_v19 = vadd.f32 %v357_v15, %v308_v13  ;;  %635 = vmatpush3.bf16.msra.mxu1 %v632_v11 }
  0xef   :  { %v365_v20 = vadd.f32 %v352_v18, %v303_v17  ;;  %v636_v21 = vpack.c.bf16 %v372_v12, %v371_v16 }
  0xf0   :  { %v374_v22 = vmax.f32 %v366_v19, 0.0 }
  0xf1   :  { %v373_v23 = vmax.f32 %v365_v20, 0.0  ;;  %637 = vmatprep.subr.bf16.mxu1 %v636_v21 }
  0xf2   :  { %639 = vmatpush3.bf16.msra.mxu1 %v636_v21 }
  0xf3   :  { %v640_v24 = vpack.c.bf16 %v374_v22, %v373_v23 }
  0xf5   :  { %641 = vmatprep.subr.bf16.mxu1 %v640_v24 }
  0xf6   :  { %643 = vmatpush3.bf16.msra.mxu1 %v640_v24 }
  0xf9   :  { %615 = vmatmul.mubr.msk.f32.vlgmr.msra.gmra.mrb[8].mxu1 %vm403_vm3, %v376_v25 }
  0xfa   :  { %617 = vmatprep.mubr.msk.f32.mxu1 %vm403_vm3, %v377_v26 }
  0xfd   :  { %618 = vmatmul.mubr.msk.f32.gmra.mrb[10].mxu1 %vm403_vm3, %v378_v27 }
 0x1cc   :  { %v616_v30 = vpop.f32.mrb[8].mxu1 }
 0x1cd   :  { %v488_v31 = vadd.f32 %v616_v30, %v391_v28  ;;  %v482_v32 = vpop.f32.mrb[9].mxu1 }
 0x1ce   :  { %v483_v33 = vadd.f32 %v482_v32, %v386_v29 }
 0x1cf   :  { %503 = vst.msk [vmem:[%s848_s7 + $0x8] sm:$0xff] %vm501_vm4, %v488_v31 }
 0x1d0   :  { %502 = vst.msk [vmem:[%s848_s7] sm:$0xff] %vm501_vm4, %v483_v33  ;;  %v619_v35 = vpop.f32.mrb[10].mxu1 }
 0x1d1   :  { %v498_v37 = vadd.f32 %v619_v35, %v401_v34  ;;  %v492_v38 = vpop.f32.mrb[11].mxu1 }
 0x1d2   :  { %v493_v39 = vadd.f32 %v492_v38, %v396_v36 }
 0x1d3   :  { %505 = vst.msk [vmem:[%s848_s7 + $0x18] sm:$0xff] %vm501_vm4, %v498_v37 }
 0x1d4   :  { %504 = vst.msk [vmem:[%s848_s7 + $0x10] sm:$0xff] %vm501_vm4, %v493_v39 }

</bundles_post_ra>
